<compile_context>
chip_gen: v7x
topology: tpu7x:2x2x1
jax: 0.10.0
libtpu: 0.0.40
codegen_flags: <defaults>
</compile_context>

<pallas_src>
import jax
import jax.numpy as jnp
from jax.experimental import pallas as pl
from jax.experimental.pallas import tpu as pltpu
from functools import partial


def _mqa_kernel(q_ref, k_ref, v_ref,
                wq_ref, bq_ref, wk_ref, bk_ref, wv_ref, bv_ref,
                wo_ref, bo_ref,
                out_ref, *maybe_attn_ref,
                n_heads, head_dim, compute_dtype):
    attn_ref = maybe_attn_ref[0] if maybe_attn_ref else None
    f32 = jnp.float32
    cdt = compute_dtype

    q = q_ref[0].astype(cdt)            # [tq, H]
    k = k_ref[0].astype(cdt)            # [Lk, H]
    v = v_ref[0].astype(cdt)            # [Lk, H]

    # Projections. Weights are pre-transposed to [in, out] and pre-cast to the compute
    # dtype in the wrapper; 1/sqrt(head_dim) is already folded into wq/bq.
    Q = jnp.dot(q, wq_ref[...], preferred_element_type=f32) + bq_ref[...]   # [tq, H]  f32
    K = jnp.dot(k, wk_ref[...], preferred_element_type=f32) + bk_ref[...]   # [Lk, hd] f32
    V = jnp.dot(v, wv_ref[...], preferred_element_type=f32) + bv_ref[...]   # [Lk, hd] f32

    tq = Q.shape[0]
    lk = K.shape[0]

    # Stack heads along the row axis: one [nh*tq, hd] x [hd, Lk] MXU matmul for all heads.
    Q_r = jnp.concatenate(
        [Q[:, h * head_dim:(h + 1) * head_dim] for h in range(n_heads)], axis=0)  # [nh*tq, hd]

    K_t = K.T                                                   # single transpose (hoisted)
    energy = jnp.dot(Q_r.astype(cdt), K_t.astype(cdt),
                     preferred_element_type=f32)                # [nh*tq, Lk]

    # Numerically-stable softmax along keys (rowwise).
    m = jnp.max(energy, axis=-1, keepdims=True)
    e = jnp.exp(energy - m)
    attn = e * pl.reciprocal(jnp.sum(e, axis=-1, keepdims=True), approx=False)  # f32

    if attn_ref is not None:
        # Single lane-dense store of all heads for this query tile: [nh, tq, Lk].
        attn_ref[0] = attn.reshape(n_heads, tq, lk).astype(attn_ref.dtype)

    # One fused context matmul for all heads.
    ctx = jnp.dot(attn.astype(cdt), V.astype(cdt),
                  preferred_element_type=f32)                   # [nh*tq, hd]

    # Recombine heads: head-major rows -> [tq, H] (head concat along lanes).
    x = jnp.concatenate(
        [ctx[h * tq:(h + 1) * tq, :] for h in range(n_heads)], axis=-1)          # [tq, H]

    out = jnp.dot(x.astype(cdt), wo_ref[...], preferred_element_type=f32) + bo_ref[...]
    out_ref[0] = out.astype(out_ref.dtype)


def _pick_block_q(Lq, Lk, H, n_heads, budget_bytes=16 << 20):
    """Largest query tile (multiple of 8, or all of Lq) whose double-buffered
    q/out/attn tiles stay within a modest VMEM budget (safe for v7x's 64 MiB)."""
    if Lq <= 8:
        return Lq
    tq = min(Lq, 512) // 8 * 8
    while tq > 8 and 8 * tq * (2 * H + n_heads * Lk) > budget_bytes:
        tq //= 2
    tq = max(8, tq // 8 * 8)
    return min(tq, Lq)


def multi_query_attention(query, key, value, params, *, n_heads,
                          compute_dtype=jnp.float32, return_attention=True):
    """query: [B,Lq,H], key/value: [B,Lk,H] float32.

    Returns (out [B,Lq,H] f32, attn [B,n_heads,Lq,Lk] f32 or None)."""
    B, Lq, H = query.shape
    Lk = key.shape[1]
    assert H % n_heads == 0
    head_dim = H // n_heads
    scale = float(head_dim) ** 0.5

    # PyTorch Linear stores weight as [out, in]; pre-transpose to [in, out].
    # Fold 1/scale into the Q projection (zero in-kernel scaling) and pre-cast weights
    # to the compute dtype (halves weight DMA when bf16). Biases stay f32 (added after
    # the f32-accumulated matmuls).
    wq = (params["wq"].T / scale).astype(compute_dtype)          # [H, H]
    wk = params["wk"].T.astype(compute_dtype)                    # [H, hd]
    wv = params["wv"].T.astype(compute_dtype)                    # [H, hd]
    wo = params["wo"].T.astype(compute_dtype)                    # [H, H]
    bq = (params["bq"] / scale).reshape(1, H).astype(jnp.float32)
    bk = params["bk"].reshape(1, head_dim).astype(jnp.float32)
    bv = params["bv"].reshape(1, head_dim).astype(jnp.float32)
    bo = params["bo"].reshape(1, H).astype(jnp.float32)

    block_q = _pick_block_q(Lq, Lk, H, n_heads)
    n_q = pl.cdiv(Lq, block_q)

    kernel = partial(_mqa_kernel, n_heads=n_heads, head_dim=head_dim,
                     compute_dtype=compute_dtype)

    const2 = lambda b, qi: (0, 0)
    # Note: weights/biases use constant index maps so they are fetched once per core.
    in_specs = [
        pl.BlockSpec((1, block_q, H), lambda b, qi: (b, qi, 0)),   # query tile
        pl.BlockSpec((1, Lk, H), lambda b, qi: (b, 0, 0)),         # key   (full length)
        pl.BlockSpec((1, Lk, H), lambda b, qi: (b, 0, 0)),         # value (full length)
        pl.BlockSpec((H, H), const2),                              # wq (scaled)
        pl.BlockSpec((1, H), const2),                              # bq (scaled)
        pl.BlockSpec((H, head_dim), const2),                       # wk
        pl.BlockSpec((1, head_dim), const2),                       # bk
        pl.BlockSpec((H, head_dim), const2),                       # wv
        pl.BlockSpec((1, head_dim), const2),                       # bv
        pl.BlockSpec((H, H), const2),                              # wo
        pl.BlockSpec((1, H), const2),                              # bo
    ]

    if return_attention:
        out_shape = (jax.ShapeDtypeStruct((B, Lq, H), jnp.float32),
                     jax.ShapeDtypeStruct((B, n_heads, Lq, Lk), jnp.float32))
        out_specs = (pl.BlockSpec((1, block_q, H), lambda b, qi: (b, qi, 0)),
                     pl.BlockSpec((1, n_heads, block_q, Lk), lambda b, qi: (b, 0, qi, 0)))
    else:
        out_shape = jax.ShapeDtypeStruct((B, Lq, H), jnp.float32)
        out_specs = pl.BlockSpec((1, block_q, H), lambda b, qi: (b, qi, 0))

    result = pl.pallas_call(
        kernel,
        out_shape=out_shape,
        grid_spec=pltpu.PrefetchScalarGridSpec(
            num_scalar_prefetch=0,
            grid=(B, n_q),
            in_specs=in_specs,
            out_specs=out_specs,
        ),
        compiler_params=pltpu.CompilerParams(
            dimension_semantics=("parallel", "parallel"),
            vmem_limit_bytes=48 * 1024 * 1024,
        ),
    )(query, key, value, wq, bq, wk, bk, wv, bv, wo, bo)

    if return_attention:
        out, attn = result
        return out, attn
    return result, None


def _reference(query, key, value, params, *, n_heads):
    """Pure-JAX mirror of the PyTorch forward for verification."""
    B, Lq, H = query.shape
    hd = H // n_heads
    scale = jnp.sqrt(jnp.float32(hd))
    Q = query @ params["wq"].T + params["bq"]                  # [B,Lq,H]
    K = key @ params["wk"].T + params["bk"]                    # [B,Lk,hd]
    V = value @ params["wv"].T + params["bv"]                  # [B,Lk,hd]
    Qb = Q.reshape(B, Lq, n_heads, hd).transpose(0, 2, 1, 3)   # [B,nh,Lq,hd]
    Kb = K.reshape(B, -1, 1, hd).transpose(0, 2, 3, 1)         # [B,1,hd,Lk]
    Vb = V.reshape(B, -1, 1, hd).transpose(0, 2, 1, 3)         # [B,1,Lk,hd]
    energy = jnp.matmul(Qb, Kb) / scale                        # [B,nh,Lq,Lk]
    attn = jax.nn.softmax(energy, axis=-1)
    x = jnp.matmul(attn, Vb)                                   # [B,nh,Lq,hd]
    x = x.transpose(0, 2, 1, 3).reshape(B, Lq, H)
    out = x @ params["wo"].T + params["bo"]
    return out, attn


def init_params(key, hid_dim, n_heads):
    hd = hid_dim // n_heads
    ks = jax.random.split(key, 8)
    s = 1.0 / jnp.sqrt(jnp.float32(hid_dim))
    return {
        "wq": jax.random.uniform(ks[0], (hid_dim, hid_dim), jnp.float32, -s, s),
        "bq": jax.random.uniform(ks[1], (hid_dim,), jnp.float32, -s, s),
        "wk": jax.random.uniform(ks[2], (hd, hid_dim), jnp.float32, -s, s),
        "bk": jax.random.uniform(ks[3], (hd,), jnp.float32, -s, s),
        "wv": jax.random.uniform(ks[4], (hd, hid_dim), jnp.float32, -s, s),
        "bv": jax.random.uniform(ks[5], (hd,), jnp.float32, -s, s),
        "wo": jax.random.uniform(ks[6], (hid_dim, hid_dim), jnp.float32, -s, s),
        "bo": jax.random.uniform(ks[7], (hid_dim,), jnp.float32, -s, s),
    }


if __name__ == "__main__":
    B, Lq, Lk, H, NH = 2, 8, 8, 32, 4

    root = jax.random.PRNGKey(0)
    kq, kk, kv, kp = jax.random.split(root, 4)
    query = jax.random.normal(kq, (B, Lq, H), jnp.float32)
    key_t = jax.random.normal(kk, (B, Lk, H), jnp.float32)
    value = jax.random.normal(kv, (B, Lk, H), jnp.float32)
    params = init_params(kp, H, NH)

    ref_out, ref_attn = _reference(query, key_t, value, params, n_heads=NH)

    # 1) Exact path (f32 MXU operands): tight tolerances vs. the reference math.
    out, attn = multi_query_attention(query, key_t, value, params, n_heads=NH,
                                      compute_dtype=jnp.float32)
    jax.block_until_ready((out, attn))
    assert out.shape == (B, Lq, H) and attn.shape == (B, NH, Lq, Lk)
    assert jnp.allclose(out, ref_out, atol=1e-4, rtol=1e-4)
    assert jnp.allclose(attn, ref_attn, atol=1e-5, rtol=1e-5)

    # 2) bf16-MXU path (v6e/v7x throughput optimization): looser tolerances, as noted
    #    in the performance review's correctness concerns.
    out16, attn16 = multi_query_attention(query, key_t, value, params, n_heads=NH,
                                          compute_dtype=jnp.bfloat16)
    jax.block_until_ready((out16, attn16))
    assert jnp.allclose(out16, ref_out, atol=1e-1, rtol=5e-2)
    assert jnp.allclose(attn16, ref_attn, atol=5e-2)

    # 3) Attention-weights writeback skipped (saves the O(nh*Lq*Lk) HBM traffic).
    out_only, no_attn = multi_query_attention(query, key_t, value, params, n_heads=NH,
                                              compute_dtype=jnp.float32,
                                              return_attention=False)
    jax.block_until_ready(out_only)
    assert no_attn is None
    assert jnp.allclose(out_only, ref_out, atol=1e-4, rtol=1e-4)

    print("KERNEL_OK")
</pallas_src>

<mosaic_0001>
module attributes {stable_mosaic.version = 11 : i64} {
  func.func @_mqa_kernel(%arg0: i32, %arg1: i32, %arg2: memref<1x8x32xf32, #tpu.memory_space<vmem>>, %arg3: memref<1x8x32xf32, #tpu.memory_space<vmem>>, %arg4: memref<1x8x32xf32, #tpu.memory_space<vmem>>, %arg5: memref<32x32xf32, #tpu.memory_space<vmem>>, %arg6: memref<1x32xf32, #tpu.memory_space<vmem>>, %arg7: memref<32x8xf32, #tpu.memory_space<vmem>>, %arg8: memref<1x8xf32, #tpu.memory_space<vmem>>, %arg9: memref<32x8xf32, #tpu.memory_space<vmem>>, %arg10: memref<1x8xf32, #tpu.memory_space<vmem>>, %arg11: memref<32x32xf32, #tpu.memory_space<vmem>>, %arg12: memref<1x32xf32, #tpu.memory_space<vmem>>, %arg13: memref<1x8x32xf32, #tpu.memory_space<vmem>>, %arg14: memref<1x4x8x8xf32, #tpu.memory_space<vmem>>) attributes {dimension_semantics = [#tpu.dimension_semantics<parallel>, #tpu.dimension_semantics<parallel>], iteration_bounds = array<i64: 2, 1>, scalar_prefetch = 0 : i64, scratch_operands = 0 : i64, tpu.core_type = #tpu.core_type<tc>, window_params = [{transform_indices = @transform_0, window_bounds = array<i64: 1, 8, 32>}, {transform_indices = @transform_1, window_bounds = array<i64: 1, 8, 32>}, {transform_indices = @transform_2, window_bounds = array<i64: 1, 8, 32>}, {pipeline_mode = #tpu.pipeline_mode<synchronous>, transform_indices = @transform_3, window_bounds = array<i64: 32, 32>}, {pipeline_mode = #tpu.pipeline_mode<synchronous>, transform_indices = @transform_4, window_bounds = array<i64: 1, 32>}, {pipeline_mode = #tpu.pipeline_mode<synchronous>, transform_indices = @transform_5, window_bounds = array<i64: 32, 8>}, {pipeline_mode = #tpu.pipeline_mode<synchronous>, transform_indices = @transform_6, window_bounds = array<i64: 1, 8>}, {pipeline_mode = #tpu.pipeline_mode<synchronous>, transform_indices = @transform_7, window_bounds = array<i64: 32, 8>}, {pipeline_mode = #tpu.pipeline_mode<synchronous>, transform_indices = @transform_8, window_bounds = array<i64: 1, 8>}, {pipeline_mode = #tpu.pipeline_mode<synchronous>, transform_indices = @transform_9, window_bounds = array<i64: 32, 32>}, {pipeline_mode = #tpu.pipeline_mode<synchronous>, transform_indices = @transform_10, window_bounds = array<i64: 1, 32>}, {transform_indices = @transform_11, window_bounds = array<i64: 1, 8, 32>}, {transform_indices = @transform_12, window_bounds = array<i64: 1, 4, 8, 8>}]} {
    %c0 = arith.constant 0 : index
    %c0_0 = arith.constant 0 : index
    %c0_1 = arith.constant 0 : index
    %0 = vector.load %arg2[%c0, %c0_0, %c0_1] : memref<1x8x32xf32, #tpu.memory_space<vmem>>, vector<1x8x32xf32>
    %1 = vector.shape_cast %0 : vector<1x8x32xf32> to vector<8x32xf32>
    %c0_2 = arith.constant 0 : index
    %c0_3 = arith.constant 0 : index
    %c0_4 = arith.constant 0 : index
    %2 = vector.load %arg3[%c0_2, %c0_3, %c0_4] : memref<1x8x32xf32, #tpu.memory_space<vmem>>, vector<1x8x32xf32>
    %3 = vector.shape_cast %2 : vector<1x8x32xf32> to vector<8x32xf32>
    %c0_5 = arith.constant 0 : index
    %c0_6 = arith.constant 0 : index
    %c0_7 = arith.constant 0 : index
    %4 = vector.load %arg4[%c0_5, %c0_6, %c0_7] : memref<1x8x32xf32, #tpu.memory_space<vmem>>, vector<1x8x32xf32>
    %5 = vector.shape_cast %4 : vector<1x8x32xf32> to vector<8x32xf32>
    %c0_8 = arith.constant 0 : index
    %c0_9 = arith.constant 0 : index
    %6 = vector.load %arg5[%c0_8, %c0_9] : memref<32x32xf32, #tpu.memory_space<vmem>>, vector<32x32xf32>
    %cst = arith.constant dense<0.000000e+00> : vector<8x32xf32>
    %7 = tpu.matmul %1, %6, %cst {dimension_numbers = #tpu.dot_dimension_numbers<[1], [0], [0], [1], [0, 0, 1, 1], [], []>} : vector<8x32xf32>, vector<32x32xf32>, vector<8x32xf32> -> vector<8x32xf32>
    %c0_10 = arith.constant 0 : index
    %c0_11 = arith.constant 0 : index
    %8 = vector.load %arg6[%c0_10, %c0_11] : memref<1x32xf32, #tpu.memory_space<vmem>>, vector<1x32xf32>
    %9 = vector.broadcast %8 : vector<1x32xf32> to vector<8x32xf32>
    %10 = arith.addf %7, %9 : vector<8x32xf32>
    %c0_12 = arith.constant 0 : index
    %c0_13 = arith.constant 0 : index
    %11 = vector.load %arg7[%c0_12, %c0_13] : memref<32x8xf32, #tpu.memory_space<vmem>>, vector<32x8xf32>
    %cst_14 = arith.constant dense<0.000000e+00> : vector<8x8xf32>
    %12 = tpu.matmul %3, %11, %cst_14 {dimension_numbers = #tpu.dot_dimension_numbers<[1], [0], [0], [1], [0, 0, 1, 1], [], []>} : vector<8x32xf32>, vector<32x8xf32>, vector<8x8xf32> -> vector<8x8xf32>
    %c0_15 = arith.constant 0 : index
    %c0_16 = arith.constant 0 : index
    %13 = vector.load %arg8[%c0_15, %c0_16] : memref<1x8xf32, #tpu.memory_space<vmem>>, vector<1x8xf32>
    %14 = vector.broadcast %13 : vector<1x8xf32> to vector<8x8xf32>
    %15 = arith.addf %12, %14 : vector<8x8xf32>
    %c0_17 = arith.constant 0 : index
    %c0_18 = arith.constant 0 : index
    %16 = vector.load %arg9[%c0_17, %c0_18] : memref<32x8xf32, #tpu.memory_space<vmem>>, vector<32x8xf32>
    %cst_19 = arith.constant dense<0.000000e+00> : vector<8x8xf32>
    %17 = tpu.matmul %5, %16, %cst_19 {dimension_numbers = #tpu.dot_dimension_numbers<[1], [0], [0], [1], [0, 0, 1, 1], [], []>} : vector<8x32xf32>, vector<32x8xf32>, vector<8x8xf32> -> vector<8x8xf32>
    %c0_20 = arith.constant 0 : index
    %c0_21 = arith.constant 0 : index
    %18 = vector.load %arg10[%c0_20, %c0_21] : memref<1x8xf32, #tpu.memory_space<vmem>>, vector<1x8xf32>
    %19 = vector.broadcast %18 : vector<1x8xf32> to vector<8x8xf32>
    %20 = arith.addf %17, %19 : vector<8x8xf32>
    %21 = vector.extract_strided_slice %10 {offsets = [0, 0], sizes = [8, 8], strides = [1, 1]} : vector<8x32xf32> to vector<8x8xf32>
    %22 = vector.extract_strided_slice %10 {offsets = [0, 8], sizes = [8, 8], strides = [1, 1]} : vector<8x32xf32> to vector<8x8xf32>
    %23 = vector.extract_strided_slice %10 {offsets = [0, 16], sizes = [8, 8], strides = [1, 1]} : vector<8x32xf32> to vector<8x8xf32>
    %24 = vector.extract_strided_slice %10 {offsets = [0, 24], sizes = [8, 8], strides = [1, 1]} : vector<8x32xf32> to vector<8x8xf32>
    %25 = tpu.concatenate %21, %22, %23, %24 in 0 : vector<8x8xf32>, vector<8x8xf32>, vector<8x8xf32>, vector<8x8xf32> -> vector<32x8xf32>
    %26 = tpu.transpose %15, [1, 0] : vector<8x8xf32> -> vector<8x8xf32>
    %cst_22 = arith.constant dense<0.000000e+00> : vector<32x8xf32>
    %27 = tpu.matmul %25, %26, %cst_22 {dimension_numbers = #tpu.dot_dimension_numbers<[1], [0], [0], [1], [0, 0, 1, 1], [], []>} : vector<32x8xf32>, vector<8x8xf32>, vector<32x8xf32> -> vector<32x8xf32>
    %cst_23 = arith.constant dense<0xFF800000> : vector<32xf32>
    %28 = vector.multi_reduction <maximumf>, %27, %cst_23 [1] : vector<32x8xf32> to vector<32xf32>
    %29 = vector.shape_cast %28 : vector<32xf32> to vector<32x1xf32>
    %30 = vector.broadcast %29 : vector<32x1xf32> to vector<32x8xf32>
    %31 = arith.subf %27, %30 : vector<32x8xf32>
    %32 = math.exp %31 : vector<32x8xf32>
    %cst_24 = arith.constant dense<0.000000e+00> : vector<32xf32>
    %33 = vector.multi_reduction <add>, %32, %cst_24 [1] : vector<32x8xf32> to vector<32xf32>
    %34 = vector.shape_cast %33 : vector<32xf32> to vector<32x1xf32>
    %35 = tpu.reciprocal %34 : vector<32x1xf32> -> vector<32x1xf32>
    %36 = vector.broadcast %35 : vector<32x1xf32> to vector<32x8xf32>
    %37 = arith.mulf %32, %36 : vector<32x8xf32>
    %38 = vector.shape_cast %37 : vector<32x8xf32> to vector<4x8x8xf32>
    %c0_25 = arith.constant 0 : index
    %c0_26 = arith.constant 0 : index
    %c0_27 = arith.constant 0 : index
    %c0_28 = arith.constant 0 : index
    %39 = vector.load %arg14[%c0_25, %c0_26, %c0_27, %c0_28] : memref<1x4x8x8xf32, #tpu.memory_space<vmem>>, vector<1x4x8x8xf32>
    %40 = vector.shape_cast %39 : vector<1x4x8x8xf32> to vector<4x8x8xf32>
    %41 = vector.shape_cast %38 : vector<4x8x8xf32> to vector<1x4x8x8xf32>
    tpu.vector_store %arg14[%c0_25, %c0_26, %c0_27, %c0_28], %41 {strides = array<i32>} : memref<1x4x8x8xf32, #tpu.memory_space<vmem>>, vector<1x4x8x8xf32>,
    %cst_29 = arith.constant dense<0.000000e+00> : vector<32x8xf32>
    %42 = tpu.matmul %37, %20, %cst_29 {dimension_numbers = #tpu.dot_dimension_numbers<[1], [0], [0], [1], [0, 0, 1, 1], [], []>} : vector<32x8xf32>, vector<8x8xf32>, vector<32x8xf32> -> vector<32x8xf32>
    %43 = vector.extract_strided_slice %42 {offsets = [0, 0], sizes = [8, 8], strides = [1, 1]} : vector<32x8xf32> to vector<8x8xf32>
    %44 = vector.extract_strided_slice %42 {offsets = [8, 0], sizes = [8, 8], strides = [1, 1]} : vector<32x8xf32> to vector<8x8xf32>
    %45 = vector.extract_strided_slice %42 {offsets = [16, 0], sizes = [8, 8], strides = [1, 1]} : vector<32x8xf32> to vector<8x8xf32>
    %46 = vector.extract_strided_slice %42 {offsets = [24, 0], sizes = [8, 8], strides = [1, 1]} : vector<32x8xf32> to vector<8x8xf32>
    %47 = tpu.concatenate %43, %44, %45, %46 in 1 : vector<8x8xf32>, vector<8x8xf32>, vector<8x8xf32>, vector<8x8xf32> -> vector<8x32xf32>
    %c0_30 = arith.constant 0 : index
    %c0_31 = arith.constant 0 : index
    %48 = vector.load %arg11[%c0_30, %c0_31] : memref<32x32xf32, #tpu.memory_space<vmem>>, vector<32x32xf32>
    %cst_32 = arith.constant dense<0.000000e+00> : vector<8x32xf32>
    %49 = tpu.matmul %47, %48, %cst_32 {dimension_numbers = #tpu.dot_dimension_numbers<[1], [0], [0], [1], [0, 0, 1, 1], [], []>} : vector<8x32xf32>, vector<32x32xf32>, vector<8x32xf32> -> vector<8x32xf32>
    %c0_33 = arith.constant 0 : index
    %c0_34 = arith.constant 0 : index
    %50 = vector.load %arg12[%c0_33, %c0_34] : memref<1x32xf32, #tpu.memory_space<vmem>>, vector<1x32xf32>
    %51 = vector.broadcast %50 : vector<1x32xf32> to vector<8x32xf32>
    %52 = arith.addf %49, %51 : vector<8x32xf32>
    %c0_35 = arith.constant 0 : index
    %c0_36 = arith.constant 0 : index
    %c0_37 = arith.constant 0 : index
    %53 = vector.load %arg13[%c0_35, %c0_36, %c0_37] : memref<1x8x32xf32, #tpu.memory_space<vmem>>, vector<1x8x32xf32>
    %54 = vector.shape_cast %53 : vector<1x8x32xf32> to vector<8x32xf32>
    %55 = vector.shape_cast %52 : vector<8x32xf32> to vector<1x8x32xf32>
    tpu.vector_store %arg13[%c0_35, %c0_36, %c0_37], %55 {strides = array<i32>} : memref<1x8x32xf32, #tpu.memory_space<vmem>>, vector<1x8x32xf32>,
    return
  }
  func.func @transform_0(%arg0: i32, %arg1: i32) -> (i32, i32, i32) {
    %c0_i32 = arith.constant 0 : i32
    %c0_i32_0 = arith.constant 0 : i32
    return %arg0, %arg1, %c0_i32 : i32, i32, i32
  }
  func.func @transform_1(%arg0: i32, %arg1: i32) -> (i32, i32, i32) {
    %c0_i32 = arith.constant 0 : i32
    %c0_i32_0 = arith.constant 0 : i32
    %c0_i32_1 = arith.constant 0 : i32
    return %arg0, %c0_i32, %c0_i32_0 : i32, i32, i32
  }
  func.func @transform_2(%arg0: i32, %arg1: i32) -> (i32, i32, i32) {
    %c0_i32 = arith.constant 0 : i32
    %c0_i32_0 = arith.constant 0 : i32
    %c0_i32_1 = arith.constant 0 : i32
    return %arg0, %c0_i32, %c0_i32_0 : i32, i32, i32
  }
  func.func @transform_3(%arg0: i32, %arg1: i32) -> (i32, i32) {
    %c0_i32 = arith.constant 0 : i32
    %c0_i32_0 = arith.constant 0 : i32
    %c0_i32_1 = arith.constant 0 : i32
    return %c0_i32, %c0_i32_0 : i32, i32
  }
  func.func @transform_4(%arg0: i32, %arg1: i32) -> (i32, i32) {
    %c0_i32 = arith.constant 0 : i32
    %c0_i32_0 = arith.constant 0 : i32
    %c0_i32_1 = arith.constant 0 : i32
    return %c0_i32, %c0_i32_0 : i32, i32
  }
  func.func @transform_5(%arg0: i32, %arg1: i32) -> (i32, i32) {
    %c0_i32 = arith.constant 0 : i32
    %c0_i32_0 = arith.constant 0 : i32
    %c0_i32_1 = arith.constant 0 : i32
    return %c0_i32, %c0_i32_0 : i32, i32
  }
  func.func @transform_6(%arg0: i32, %arg1: i32) -> (i32, i32) {
    %c0_i32 = arith.constant 0 : i32
    %c0_i32_0 = arith.constant 0 : i32
    %c0_i32_1 = arith.constant 0 : i32
    return %c0_i32, %c0_i32_0 : i32, i32
  }
  func.func @transform_7(%arg0: i32, %arg1: i32) -> (i32, i32) {
    %c0_i32 = arith.constant 0 : i32
    %c0_i32_0 = arith.constant 0 : i32
    %c0_i32_1 = arith.constant 0 : i32
    return %c0_i32, %c0_i32_0 : i32, i32
  }
  func.func @transform_8(%arg0: i32, %arg1: i32) -> (i32, i32) {
    %c0_i32 = arith.constant 0 : i32
    %c0_i32_0 = arith.constant 0 : i32
    %c0_i32_1 = arith.constant 0 : i32
    return %c0_i32, %c0_i32_0 : i32, i32
  }
  func.func @transform_9(%arg0: i32, %arg1: i32) -> (i32, i32) {
    %c0_i32 = arith.constant 0 : i32
    %c0_i32_0 = arith.constant 0 : i32
    %c0_i32_1 = arith.constant 0 : i32
    return %c0_i32, %c0_i32_0 : i32, i32
  }
  func.func @transform_10(%arg0: i32, %arg1: i32) -> (i32, i32) {
    %c0_i32 = arith.constant 0 : i32
    %c0_i32_0 = arith.constant 0 : i32
    %c0_i32_1 = arith.constant 0 : i32
    return %c0_i32, %c0_i32_0 : i32, i32
  }
  func.func @transform_11(%arg0: i32, %arg1: i32) -> (i32, i32, i32) {
    %c0_i32 = arith.constant 0 : i32
    %c0_i32_0 = arith.constant 0 : i32
    return %arg0, %arg1, %c0_i32 : i32, i32, i32
  }
  func.func @transform_12(%arg0: i32, %arg1: i32) -> (i32, i32, i32, i32) {
    %c0_i32 = arith.constant 0 : i32
    %c0_i32_0 = arith.constant 0 : i32
    %c0_i32_1 = arith.constant 0 : i32
    return %arg0, %c0_i32, %arg1, %c0_i32_0 : i32, i32, i32, i32
  }
}

</mosaic_0001>

<bundles_post_ra>
// kernel: tpu_custom_call.1
= control target key start
LH: loop header
LB: loop body
LE: loop exit
PB: predicated region body
PF: predicated region fallthrough
CT: control target
= control target key end

     0   :  { %s2202_s0 = inlined_call_operand.vmem [shape: f32[2,8,32], index: 0, kind: input, shape index: {}]   ;;  %s2203_s1 = inlined_call_operand.hbm [shape: f32[2,8,32], index: 1, kind: input, shape index: {}]   ;;  %s2204_s2 = inlined_call_operand.hbm [shape: f32[2,8,32], index: 2, kind: input, shape index: {}]   ;;  %s2205_s3 = inlined_call_operand.vmem [shape: f32[32,32], index: 3, kind: input, shape index: {}]   ;;  %s2206_s4 = inlined_call_operand.vmem [shape: f32[1,32], index: 4, kind: input, shape index: {}]   ;;  %s2207_s5 = inlined_call_operand.vmem [shape: f32[32,8], index: 5, kind: input, shape index: {}]   ;;  %s2208_s6 = inlined_call_operand.vmem [shape: f32[1,8], index: 6, kind: input, shape index: {}]   ;;  %s2209_s7 = inlined_call_operand.vmem [shape: f32[32,8], index: 7, kind: input, shape index: {}]   ;;  %s2210_s8 = inlined_call_operand.vmem [shape: f32[1,8], index: 8, kind: input, shape index: {}]   ;;  %s2211_s9 = inlined_call_operand.vmem [shape: f32[32,32], index: 9, kind: input, shape index: {}]   ;;  %s2212_s10 = inlined_call_operand.vmem [shape: f32[1,32], index: 10, kind: input, shape index: {}]   ;;  %s2213_s11 = inlined_call_operand.hbm [shape: f32[2,8,32], index: 11, kind: output, shape index: {0}]   ;;  %s2214_s12 = inlined_call_operand.hbm [shape: f32[2,4,8,8], index: 12, kind: output, shape index: {1}]  }
   0x1   :  { %2224 = sst [smem:[#allocation20_spill]] %s2203_s1 }
   0x2   :  { %18 = vsyncpa [#allocation3], 0 }
   0x3   :  { %20 = vsyncpa [#allocation3 + $0x1], 0 }
   0x4   :  { %21 = vsyncpa [#allocation6], 0 }
   0x5   :  { %23 = vsyncpa [#allocation6 + $0x1], 0 }
   0x6   :  { %24 = vsyncpa [#allocation4], 0 }
   0x7   :  { %26 = vsyncpa [#allocation4 + $0x1], 0 }
   0x8   :  { %27 = vsyncpa [#allocation9], 0 }
   0x9   :  { %29 = vsyncpa [#allocation9 + $0x1], 0  ;;  %s1826_s21 = smov 0   ;;  %s1828_s22 = smov 0  }
   0xa   :  { %s1830_s23 = smov 0   ;;  %s1832_s24 = smov 0  }
   0xb   :  { %s1834_s25 = smov 0   ;;  %s1836_s26 = smov 0  }
   0xc LB: > { %2225 = sst [smem:[#allocation14_spill]] %s1725_s21  ;;  %s1316_s27 = sadd.s32 4294967295, %s1745_s26   ;;  %s1745_s26 = sphi %s1836_s26, %s35_s26   ;;  %s1741_s25 = sphi %s1834_s25, %s2253_s25   ;;  %s1737_s24 = sphi %s1832_s24, %s2252_s24   ;;  %s1733_s23 = sphi %s1830_s23, %s2251_s23   ;;  %s1729_s22 = sphi %s1828_s22, %s2255_s22   ;;  %s1725_s21 = sphi %s1826_s21, %s2254_s21  }
   0xd   : > { %2226 = sst [smem:[#allocation15_spill]] %s1733_s23  ;;  %s1317_s28 = sadd.s32 4294967294, %s1745_s26  }
   0xe   : > { %2227 = sst [smem:[#allocation16_spill]] %s1741_s25  ;;  %s47_s29 = sadd.s32 1, %s1741_s25 }
   0xf   : > { %s82_s30 = sadd.s32 1, %s1733_s23  ;;  %p49_p0 = scmp.ge.s32.totalorder %s47_s29, 2 }
  0x10   : > { %p89_p1 = scmp.ne.s32.totalorder %s1733_s23, %s1729_s22  ;;  %p90_p2 = scmp.eq.s32.totalorder %s1745_s26, 0 }
  0x11   : > { %p95_p3 = scmp.ne.s32.totalorder %s1729_s22, %s1725_s21  ;;  %s2257_s29 = smov (%p49_p0, %s47_s29), 0 }
  0x12   : > { %2228 = sst [smem:[#allocation17_spill]] %s2257_s29  ;;  %p1867_p4 = por %p90_p2, %p89_p1 }
  0x13   : > { %p96_p5 = scmp.eq.s32.totalorder %s1316_s27, 0  ;;  %s79_s14 = ssub.s32 %s1741_s25, %s2257_s29 }
  0x14   : > { %p315_p6 = scmp.eq.s32.totalorder %s1316_s27, 1  ;;  %p80_p7 = scmp.eq.s32.totalorder %s79_s14, 0 }
  0x15   : > { %p1873_p8 = por %p96_p5, %p95_p3  ;;  %p321_p10 = scmp.eq.s32.totalorder %s1317_s28, 1 }
  0x16   : > { %p1877_p9 = por %p315_p6, %p89_p1  ;;  %p1491_p13 = scmp.lt.s32.totalorder %s1745_s26, 2 }
  0x17   : > { %s2230_s15 = scalar_select %p1873_p8, 1, 0 }
  0x18   : > { %s2231_s16 = scalar_select %p1877_p9, 1, 0 }
  0x19   : > { %s1882_s17 = scalar_select %p80_p7, %s1733_s23, %s82_s30  }
  0x1a   : > { %p1884_p11 = por %p321_p10, %p95_p3  ;;  %s1891_s19 = sand.u32 1, %s1733_s23  }
  0x1b   : > { %2232 = sst [smem:[#allocation18_spill]] %s1882_s17  ;;  %s2217_s20 = sshll.u32 %s1891_s19, 3 }
  0x1c   : > { %s2233_s18 = scalar_select %p1884_p11, 1, 0 }
  0x1d   : > { %s2218_s27 = sshll.u32 %s1741_s25, 7  ;;  %s2235_s1 = sld [smem:[#allocation20_spill]] }
  0x1e   : > { %2234 = sst [smem:[#allocation19_spill]] %s2233_s18  ;;  %s407_s30 = scalar_lea.vmem [#allocation2], %s2217_s20 }
  0x1f   : > { %s414_s17 = sshll.u32 %s407_s30, 4  ;;  %p1908_p0 = pnand %p1491_p13, %p1867_p4  ;;  %s1904_s17 = int_to_ptr.vmem [resolvable:$true] %s414_s17 }
  0x20   : > { %s404_s29 = scalar_lea.sflag [#allocation3], %s1891_s19 }
  0x21   : > { %p1569_p5 = pneg %p1908_p0 }
  0x23   : > { %s1900_s28 = scalar_lea.hbm %s2235_s1, %s2218_s27  ;;  %s1572_s13 = scalar_lea.hbm %s2235_s1, 256 }
  0x24   : > { %s1567_s14 = scalar_lea.hbm %s1900_s28, 128  ;;  %p1573_p4 = scmp.lt.u32.totalorder %s1900_s28, %s2235_s1 }
  0x25   : > { %p1568_p3 = scmp.ne.s32.totalorder %s1900_s28, %s1567_s14  ;;  %p1574_p10 = scmp.lt.u32.totalorder %s1572_s13, %s1567_s14 }
  0x26   : > { %p1576_p12 = scmp.lt.u32.totalorder %s1567_s14, %s1900_s28 }
  0x27   : > { %p1570_p6 = pnand %p1569_p5, %p1568_p3  ;;  %p1575_p13 = por %p1574_p10, %p1573_p4 }
  0x29   : > { %p1571_p7 = pneg %p1570_p6  ;;  %p1577_p1 = por %p1576_p12, %p1575_p13 }
  0x2b   : > { %p1578_p2 = pnand %p1577_p1, %p1571_p7 }
  0x2d   : > { %1581 = shalt.err (!%p1578_p2)
}
  0x2e   : > { %s1582_s21 = scalar_lea.vmem %s1904_s17, 128  ;;  %s1747_s20 = smov [#allocation2]  }
  0x2f   : > { %p1583_p3 = scmp.ne.s32.totalorder %s1904_s17, %s1582_s21  ;;  %s1587_s30 = sshll.u32 %s1747_s20, 4  ;;  %s1588_s30 = int_to_ptr.vmem [resolvable:$false] %s1587_s30 }
  0x30   : > { %s1589_s18 = scalar_lea.vmem %s1588_s30, 256  ;;  %p1590_p9 = scmp.lt.s32.totalorder %s1904_s17, %s1588_s30 }
  0x31   : > { %p1585_p6 = pnand %p1583_p3, %p1569_p5  ;;  %p1591_p4 = scmp.lt.s32.totalorder %s1589_s18, %s1582_s21 }
  0x33   : > { %p1586_p11 = pneg %p1585_p6  ;;  %p1592_p10 = por %p1591_p4, %p1590_p9 }
  0x35   : > { %p1593_p12 = pnand %p1592_p10, %p1586_p11 }
  0x37   : > { %1596 = shalt.err (!%p1593_p12)
}
  0x38   : > { %1480 = dma.hbm_to_vmem [thread:$0]  (!%p1908_p0), %s1900_s28, 128, %s1904_s17, %s404_s29  }
  0x39   : > { %p2237_p1 = scmp.lt.s32.totalorder %s1745_s26, 3  ;;  %p2238_p2 = scmp.ge.s32.totalorder %s1745_s26, 1 }
  0x3a   : > { %s2240_s21 = sshll.u32 %s1741_s25, 7  ;;  %s2241_s30 = sshll.u32 %s1891_s19, 3 }
  0x3b   : > { %p1944_p7 = pnand %p2238_p2, %p2237_p1  ;;  %s1953_s20 = scalar_lea.hbm %s2204_s2, %s2240_s21 }
  0x3c   : > { %s425_s18 = scalar_lea.vmem [#allocation5], %s2241_s30  ;;  %s422_s17 = scalar_lea.sflag [#allocation6], %s1891_s19 }
  0x3d   : > { %s2239_s27 = scalar_select %p1944_p7, 1, 0 }
  0x3e   : > { %s432_s1 = sshll.u32 %s425_s18, 4  ;;  %s1597_s28 = scalar_lea.hbm %s1953_s20, 128  ;;  %s433_s1 = int_to_ptr.vmem [resolvable:$true] %s432_s1 }
  0x3f   : > { %p1598_p9 = scmp.ne.s32.totalorder %s1953_s20, %s1597_s28  ;;  %s1602_s21 = scalar_lea.hbm %s2204_s2, 256 }
  0x40   : > { %p1603_p3 = scmp.lt.u32.totalorder %s1953_s20, %s2204_s2  ;;  %p1604_p6 = scmp.lt.u32.totalorder %s1602_s21, %s1597_s28 }
  0x41   : > { %p1600_p11 = pnand %p1598_p9, %p1569_p5  ;;  %p1606_p10 = scmp.lt.u32.totalorder %s1597_s28, %s1953_s20 }
  0x42   : > { %p1605_p4 = por %p1604_p6, %p1603_p3 }
  0x43   : > { %p1601_p13 = pneg %p1600_p11 }
  0x44   : > { %p1607_p12 = por %p1606_p10, %p1605_p4 }
  0x46   : > { %p1608_p1 = pnand %p1607_p12, %p1601_p13 }
  0x48   : > { %1611 = shalt.err (!%p1608_p1)
}
  0x49   : > { %s1612_s19 = scalar_lea.vmem %s433_s1, 128  ;;  %s1748_s30 = smov [#allocation5]  }
  0x4a   : > { %p1613_p2 = scmp.ne.s32.totalorder %s433_s1, %s1612_s19  ;;  %s1617_s25 = sshll.u32 %s1748_s30, 4  ;;  %s1618_s25 = int_to_ptr.vmem [resolvable:$false] %s1617_s25 }
  0x4b   : > { %s1619_s18 = scalar_lea.vmem %s1618_s25, 256  ;;  %p1620_p8 = scmp.lt.s32.totalorder %s433_s1, %s1618_s25 }
  0x4c   : > { %p1615_p9 = pnand %p1613_p2, %p1569_p5  ;;  %p1621_p7 = scmp.lt.s32.totalorder %s1619_s18, %s1612_s19 }
  0x4e   : > { %p1616_p11 = pneg %p1615_p9  ;;  %p1622_p3 = por %p1621_p7, %p1620_p8 }
  0x50   : > { %p1623_p6 = pnand %p1622_p3, %p1616_p11 }
  0x52   : > { %1626 = shalt.err (!%p1623_p6)
}
  0x53   : > { %1483 = dma.hbm_to_vmem [thread:$0]  (!%p1908_p0), %s1953_s20, 128, %s433_s1, %s422_s17  }
  0x54   : > { %p2242_p13 = scmp.ne.s32.totalorder %s2239_s27, 0 }
  0x55   : > { %s1980_s28 = sand.u32 (!%p2242_p13), 1, %s1729_s22   ;;  %p2243_p8 = scmp.ne.s32.totalorder (!%p2242_p13), %s2230_s15, 0 }
  0x56   : > { %441 = sbr.rel (%p2242_p13) target bundleno = 1530 (0x5fa), region = 64  ;;  %s1983_s29 = sshll.u32 (!%p2242_p13), %s1980_s28, 3 }
  0x57   : > { %s444_s21 = scalar_lea.sflag (!%p2242_p13), [#allocation3], %s1980_s28  ;;  %s447_s14 = scalar_lea.vmem (!%p2242_p13), [#allocation2], %s1983_s29 }
  0x5d   : > { %1708 = dma.done.wait (%p2243_p8), %s444_s21, 128  }
  0x5e   : > { %1710 = vsyncadd (%p2243_p8), %s444_s21, 4294967168  ;;  %s453_s1 = scalar_lea.sflag [#allocation6], %s1980_s28 }
  0x5f   : > { %1712 = dma.done.wait (%p2243_p8), %s453_s1, 128  }
  0x60   : > { %1714 = vsyncadd (%p2243_p8), %s453_s1, 4294967168  ;;  %p514_p0 = scmp.lt.s32.totalorder %s1737_s24, 1  ;;  %v1749_v0 = vmov 0.0|0.0   ;;  %vm1750_vm0 = vmmov 0   ;;  %v1751_v1 = vmov 0.0   ;;  %v524_v2 = vld [vmem:[%s2205_s3] sm:$0xff] }
  0x61   : > { %1445 = vmatprep.subr.bf16.mxu0 %v1749_v0  ;;  %1393 = vmatprep.mubr.msk.f32.mxu0 %vm1750_vm0, %v1751_v1  ;;  %v525_v3 = vld [vmem:[%s2205_s3 + $0x8] sm:$0xff]  ;;  %v526_v4 = vld [vmem:[%s2205_s3 + $0x10] sm:$0xff]  ;;  %v527_v6 = vld [vmem:[%s2205_s3 + $0x18] sm:$0xff]  ;;  %vm535_vm1 = vcmask 261120   ;;  %vm784_vm2 = vcmask 64512   ;;  %s1753_s17 = smov 120  }
  0x62   : > { %1451 = vmatprep.subr.bf16.mxu1 %v1749_v0  ;;  %1404 = vmatprep.mubr.msk.f32.mxu1 %vm1750_vm0, %v1751_v1  ;;  %s515_s27 = scalar_select %p514_p0, %s1737_s24, 1  ;;  %v1446_v5 = vpack.c.bf16 %v525_v3, %v524_v2  ;;  %v609_v7 = vld [vmem:[%s2207_s5] sm:$0xff]  ;;  %v610_v8 = vld [vmem:[%s2207_s5 + $0x8] sm:$0xff]  ;;  %v611_v9 = vld [vmem:[%s2207_s5 + $0x10] sm:$0xff]  ;;  %v1449_v11 = vpack.c.bf16 %v527_v6, %v526_v4  ;;  %vm1039_vm3 = vcmask 130048   ;;  %vm1041_vm4 = vcmask 195584  }
  0x63   : > { %v612_v10 = vld [vmem:[%s2207_s5 + $0x18] sm:$0xff]  ;;  %v1452_v12 = vpack.c.bf16 %v610_v8, %v609_v7  ;;  %v522_v15 = vld [vmem:[%s447_s14] sm:$0xff]  ;;  %s1752_s14 = smov 104   ;;  %s1754_s15 = smov 112   ;;  %v695_v29 = vld [vmem:[%s2209_s7 + $0x10] sm:$0xff] }
  0x64   : > { %s1329_s21 = sshll.u32 %s515_s27, 3  ;;  %1447 = vmatpush3.bf16.msra.mxu0 %v1446_v5  ;;  %v1455_v13 = vpack.c.bf16 %v612_v10, %v611_v9  ;;  %v1330_v16 = vld [vmem:[%s2206_s4] ss:$0 sm:$0xff]  ;;  %v694_v28 = vld [vmem:[%s2209_s7 + $0x8] sm:$0xff]  ;;  %v696_v31 = vld [vmem:[%s2209_s7 + $0x18] sm:$0xff]  ;;  %s2244_s1 = scalar_lea.vmem [#allocation5], %s1983_s29 }
  0x65   : > { %1448 = vmatprep.subr.bf16.mxu0 %v1749_v0  ;;  %s520_s25 = scalar_lea.vmem %s2202_s0, %s1329_s21  ;;  %1453 = vmatpush3.bf16.msra.mxu1 %v1452_v12  ;;  %v1332_v18 = vld [vmem:[%s2208_s6] ss:$0 sm:$0xff]  ;;  %v1461_v32 = vpack.c.bf16 %v696_v31, %v695_v29  ;;  %v523_v33 = vld [vmem:[%s2244_s1] sm:$0xff]  ;;  %s1755_s1 = smov 8  }
  0x66   : > { %1454 = vmatprep.subr.bf16.mxu1 %v1749_v0  ;;  %v521_v14 = vld [vmem:[%s520_s25] sm:$0xff]  ;;  %s1756_s20 = smov 16   ;;  %s1134_s27 = scalar_lea.sflag [#allocation9], %s1980_s28 }
  0x67   : > { %v693_v27 = vld [vmem:[%s2209_s7] sm:$0xff]  ;;  %p2245_p7 = scmp.ne.s32.totalorder %s2231_s16, 0  ;;  %s1758_s18 = smov [#allocation8]  }
  0x68   : > { %1450 = vmatpush3.bf16.msra.mxu0 %v1449_v11  ;;  %v1458_v30 = vpack.c.bf16 %v694_v28, %v693_v27  ;;  %v1334_v62 = vld [vmem:[%s2210_s8] ss:$0 sm:$0xff]  ;;  %s1631_s21 = sshll.u32 %s1758_s18, 4  ;;  %s1632_s21 = int_to_ptr.vmem [resolvable:$false] %s1631_s21 }
  0x69   : > { %1457 = vmatprep.subr.bf16.mxu0 %v1749_v0  ;;  %1456 = vmatpush3.bf16.msra.mxu1 %v1455_v13 }
  0x6b   : > { %1394 = vmatmul.mubr.msk.f32.vlgmr.msra.gmra.mrb[0].mxu0 %vm535_vm1, %v521_v14 }
  0x6c   : > { %1415 = vmatprep.mubr.msk.f32.mxu0 %vm1750_vm0, %v1751_v1  ;;  %1405 = vmatmul.mubr.msk.f32.vlgmr.msra.gmra.mrb[0].mxu1 %vm535_vm1, %v522_v15  ;;  %v1043_v15 = vld [vmem:[%s2211_s9] sm:$0xff] }
  0x6d   : > { %1459 = vmatpush3.bf16.msra.mxu0 %v1458_v30 }
  0x6e   : > { %1460 = vmatprep.subr.bf16.mxu0 %v1749_v0 }
  0x71   : > { %1462 = vmatpush3.bf16.msra.mxu0 %v1461_v32 }
  0x74   : > { %1416 = vmatmul.mubr.msk.f32.vlgmr.msra.gmra.mrb[2].mxu0 %vm535_vm1, %v523_v33 }
 0x13e   : > { %v605_v17 = vpop.f32.mrb[0].mxu0 }
 0x13f   : > { %v606_v19 = vadd.f32 %v1330_v16, %v605_v17  ;;  %v1395_v20 = vpop.f32.mrb[1].mxu0  ;;  %v689_v21 = vpop.f32.mrb[0].mxu1  ;;  %v1044_v16 = vld [vmem:[%s2211_s9 + $0x8] sm:$0xff] }
 0x140   : > { %v690_v22 = vadd.f32 %v1332_v18, %v689_v21  ;;  %v1406_v23 = vpop.f32.mrb[1].mxu1  ;;  %v1464_v17 = vpack.c.bf16 %v1044_v16, %v1043_v15  ;;  %v1045_v18 = vld [vmem:[%s2211_s9 + $0x10] sm:$0xff] }
 0x141   : > { %782 = vrot.lane.b32.xlu1 %v606_v19, %s1752_s14  ;;  %778 = vrot.lane.b32.xlu0 %v606_v19, %s1753_s17  ;;  %s1328_s17 = sshll.u32 %s1980_s28, 5  ;;  %s1757_s14 = smov 24  }
 0x142   : > { %1420 = vmatprep.mubr.msk.f32.mxu1 %vm784_vm2, %v606_v19  ;;  %1418 = vmatprep.subr.msk.mxu1 %vm784_vm2, %v690_v22 }
 0x143   : > { %1419 = vmatpush3.xpose.msk.msra.mxu1 %vm784_vm2, %v690_v22 }
 0x144   : > { %1463 = vmatprep.subr.bf16.mxu1 %v1749_v0 }
 0x145   : > { %780 = vrot.lane.b32.xlu0 %v606_v19, %s1754_s15  ;;  %s2080_s15 = scalar_lea.vmem [#allocation8], %s1328_s17  ;;  %v1046_v19 = vld [vmem:[%s2211_s9 + $0x18] sm:$0xff]  ;;  %s1354_s17 = sshll.u32 %s1737_s24, 9 }
 0x146   : > { %v1467_v20 = vpack.c.bf16 %v1046_v19, %v1045_v18  ;;  %s1162_s13 = sshll.u32 %s2080_s15, 4  ;;  %s2115_s23 = scalar_lea.hbm %s2214_s12, %s1354_s17  ;;  %s2117_s13 = int_to_ptr.vmem [resolvable:$true] %s1162_s13 }
 0x147   : > { %v773_v63 = vpop.f32.mrb[2].mxu0  ;;  %s1627_s25 = scalar_lea.vmem %s2117_s13, 512  ;;  %p1634_p12 = scmp.lt.s32.totalorder %s2117_s13, %s1632_s21 }
 0x148   : > { %v1417_v2 = vpop.f32.mrb[3].mxu0  ;;  %p1628_p5 = scmp.ne.s32.totalorder %s2117_s13, %s1627_s25 }
 0x14a   : > { %p1629_p4 = pnand %p1628_p5, %p2245_p7 }
 0x14c   : > { %p1630_p10 = pneg %p1629_p4 }
 0x1b3   : > { %v779_v24 = vpop.permute.xlu0 %778  ;;  %v783_v26 = vpop.permute.xlu1 %782 }
 0x1b4   : > { %1421 = vmatmul.mubr.msk.f32.vlgmr.msra.gmra.mrb[2].mxu1 %vm784_vm2, %v779_v24 }
 0x1b5   : > { %1465 = vmatpush3.bf16.msra.mxu1 %v1464_v17 }
 0x1b6   : > { %1466 = vmatprep.subr.bf16.mxu1 %v1749_v0 }
 0x1b7   : > { %v781_v25 = vpop.permute.xlu0 %780 }
 0x1b8   : > { %1423 = vmatprep.mubr.msk.f32.mxu1 %vm784_vm2, %v781_v25 }
 0x1b9   : > { %1424 = vmatmul.mubr.msk.f32.gmra.mrb[4].mxu1 %vm784_vm2, %v783_v26 }
 0x1ba   : > { %1442 = vmatprep.mubr.msk.f32.mxu1 %vm1750_vm0, %v1751_v1  ;;  %v774_v1 = vadd.f32 %v1334_v62, %v773_v63  ;;  %1468 = vmatpush3.bf16.msra.mxu1 %v1467_v20 }
 0x1bc   : > { %1426 = vmatprep.subr.mxu0 %v774_v1 }
 0x1bd   : > { %1427 = vmatpush3.msra.mxu0 %v774_v1 }
 0x287   : > { %v1422_v34 = vpop.f32.mrb[2].mxu1 }
 0x288   : > { %v862_v35 = vpop.f32.mrb[3].mxu1  ;;  %v884_v36 = vsel %vm784_vm2, %v1422_v34, -inf }
 0x289   : > { %885 = vmax.xlane.f32.xlu0 %v884_v36  ;;  %v881_v37 = vsel %vm784_vm2, %v862_v35, -inf }
 0x28a   : > { %882 = vmax.xlane.f32.xlu1 %v881_v37 }
 0x28c   : > { %v1425_v38 = vpop.f32.mrb[4].mxu1 }
 0x28d   : > { %v872_v39 = vpop.f32.mrb[5].mxu1  ;;  %v890_v40 = vsel %vm784_vm2, %v1425_v38, -inf }
 0x28e   : > { %891 = vmax.xlane.f32.xlu1 %v890_v40  ;;  %v887_v41 = vsel %vm784_vm2, %v872_v39, -inf }
 0x28f   : > { %888 = vmax.xlane.f32.xlu0 %v887_v41 }
 0x316   : > { %v886_v42 = vpop.xlane.xlu0 %885 }
 0x317   : > { %v894_v43 = vsub.f32 %v1422_v34, %v886_v42  ;;  %v883_v44 = vpop.xlane.xlu1 %882 }
 0x318   : > { %v893_v45 = vsub.f32 %v862_v35, %v883_v44 }
 0x319   : > { %v899_v46 = vmul.f32 1.442695, %v894_v43 }
 0x31a   : > { %v897_v47 = vmul.f32 1.442695, %v893_v45 }
 0x31b   : > { %1551 = vpow2.f32 %v899_v46  ;;  %v892_v48 = vpop.xlane.xlu1 %891 }
 0x31c   : > { %1553 = vpow2.f32 %v897_v47  ;;  %v896_v49 = vsub.f32 %v1425_v38, %v892_v48  ;;  %v889_v50 = vpop.xlane.xlu0 %888 }
 0x31d   : > { %v895_v51 = vsub.f32 %v872_v39, %v889_v50 }
 0x31e   : > { %v903_v52 = vmul.f32 1.442695, %v896_v49 }
 0x31f   : > { %v901_v53 = vmul.f32 1.442695, %v895_v51 }
 0x320   : > { %1555 = vpow2.f32 %v903_v52 }
 0x321   : > { %1557 = vpow2.f32 %v901_v53 }
 0x325   : > { %v1552_v54 = vpop.eup %1551 }
 0x326   : > { %v1554_v55 = vpop.eup %1553  ;;  %v908_v56 = vsel %vm784_vm2, %v1552_v54, 0.0 }
 0x327   : > { %909 = vadd.xlane.f32.xlu1 %v908_v56  ;;  %v905_v57 = vsel %vm784_vm2, %v1554_v55, 0.0 }
 0x328   : > { %906 = vadd.xlane.f32.xlu0 %v905_v57 }
 0x32a   : > { %v1556_v58 = vpop.eup %1555 }
 0x32b   : > { %v1558_v59 = vpop.eup %1557  ;;  %v914_v60 = vsel %vm784_vm2, %v1556_v58, 0.0 }
 0x32c   : > { %915 = vadd.xlane.f32.xlu1 %v914_v60  ;;  %v911_v61 = vsel %vm784_vm2, %v1558_v59, 0.0 }
 0x32d   : > { %912 = vadd.xlane.f32.xlu0 %v911_v61 }
 0x3b4   : > { %v910_v3 = vpop.xlane.xlu1 %909 }
 0x3b5   : > { %1559 = vrcp.f32 %v910_v3  ;;  %v907_v4 = vpop.xlane.xlu0 %906 }
 0x3b6   : > { %1561 = vrcp.f32 %v907_v4 }
 0x3b9   : > { %v916_v5 = vpop.xlane.xlu1 %915 }
 0x3ba   : > { %1563 = vrcp.f32 %v916_v5  ;;  %v913_v6 = vpop.xlane.xlu0 %912 }
 0x3bb   : > { %1565 = vrcp.f32 %v913_v6 }
 0x3bf   : > { %v1560_v7 = vpop.eup %1559 }
 0x3c0   : > { %v1562_v8 = vpop.eup %1561  ;;  %v922_v9 = vmul.f32 %v1560_v7, %v1552_v54 }
 0x3c1   : > { %v921_v10 = vmul.f32 %v1562_v8, %v1554_v55 }
 0x3c2   : > { %926 = vst.msk [vmem:[%s2080_s15 + $0x8] sm:$0xff] %vm784_vm2, %v922_v9 }
 0x3c3   : > { %925 = vst.msk [vmem:[%s2080_s15] sm:$0xff] %vm784_vm2, %v921_v10  ;;  %1428 = vmatprep.mubr.msk.f32.mxu0 %vm784_vm2, %v921_v10 }
 0x3c4   : > { %v1564_v11 = vpop.eup %1563  ;;  %1429 = vmatmul.mubr.msk.f32.vlgmr.msra.gmra.mrb[4].mxu0 %vm784_vm2, %v922_v9 }
 0x3c5   : > { %v1566_v12 = vpop.eup %1565  ;;  %v924_v13 = vmul.f32 %v1564_v11, %v1556_v58 }
 0x3c6   : > { %v923_v14 = vmul.f32 %v1566_v12, %v1558_v59 }
 0x3c7   : > { %928 = vst.msk [vmem:[%s2080_s15 + $0x18] sm:$0xff] %vm784_vm2, %v924_v13 }
 0x3c8   : > { %927 = vst.msk [vmem:[%s2080_s15 + $0x10] sm:$0xff] %vm784_vm2, %v923_v14  ;;  %1431 = vmatprep.mubr.msk.f32.mxu0 %vm784_vm2, %v923_v14  ;;  %s1633_s15 = scalar_lea.vmem %s1632_s21, 1024 }
 0x3c9   : > { %1432 = vmatmul.mubr.msk.f32.gmra.mrb[6].mxu0 %vm784_vm2, %v924_v13  ;;  %p1635_p1 = scmp.lt.s32.totalorder %s1633_s15, %s1627_s25 }
 0x3cb   : > { %p1636_p2 = por %p1635_p1, %p1634_p12 }
 0x3cd   : > { %p1637_p9 = pnand %p1636_p2, %p1630_p10 }
 0x497   : > { %v1430_v21 = vpop.f32.mrb[4].mxu0 }
 0x498   : > { %1027 = vrot.lane.b32.xlu0 %v1430_v21, %s1755_s1  ;;  %v1007_v22 = vpop.f32.mrb[5].mxu0 }
 0x49c   : > { %v1433_v23 = vpop.f32.mrb[6].mxu0 }
 0x49d   : > { %v1017_v24 = vpop.f32.mrb[7].mxu0 }
 0x49e   : > { %1031 = vrot.lane.b32.xlu1 %v1017_v24, %s1756_s20 }
 0x4a2   : > { %1035 = vrot.lane.b32.xlu1 %v1433_v23, %s1757_s14 }
 0x50a   : > { %v1028_v0 = vpop.permute.xlu0 %1027 }
 0x50b   : > { %v1038_v26 = vsel %vm784_vm2, %v1007_v22, %v1028_v0 }
 0x510   : > { %v1032_v25 = vpop.permute.xlu1 %1031 }
 0x511   : > { %v1040_v27 = vsel %vm1039_vm3, %v1038_v26, %v1032_v25 }
 0x514   : > { %v1036_v28 = vpop.permute.xlu1 %1035 }
 0x515   : > { %v1042_v29 = vsel %vm1041_vm4, %v1040_v27, %v1036_v28 }
 0x516   : > { %1443 = vmatmul.mubr.msk.f32.vlgmr.msra.gmra.mrb[6].mxu1 %vm535_vm1, %v1042_v29 }
 0x517   : > { %1640 = shalt.err (!%p1637_p9)
}
 0x518   : > { %s1641_s20 = scalar_lea.hbm %s2115_s23, 512  ;;  %s1645_s19 = scalar_lea.hbm %s2214_s12, 1024 }
 0x519   : > { %p1642_p11 = scmp.ne.s32.totalorder %s2115_s23, %s1641_s20  ;;  %p1646_p13 = scmp.lt.u32.totalorder %s2115_s23, %s2214_s12 }
 0x51a   : > { %p1647_p8 = scmp.lt.u32.totalorder %s1645_s19, %s1641_s20  ;;  %p1649_p5 = scmp.lt.u32.totalorder %s1641_s20, %s2115_s23 }
 0x51b   : > { %p1643_p3 = pnand %p1642_p11, %p2245_p7 }
 0x51c   : > { %p1648_p0 = por %p1647_p8, %p1646_p13 }
 0x51d   : > { %p1644_p6 = pneg %p1643_p3 }
 0x51e   : > { %p1650_p4 = por %p1649_p5, %p1648_p0 }
 0x520   : > { %p1651_p10 = pnand %p1650_p4, %p1644_p6 }
 0x522   : > { %1654 = shalt.err (!%p1651_p10)
}
 0x523   : > { %s1759_s25 = smov 128   ;;  %v1345_v30 = vld [vmem:[%s2212_s10] ss:$0 sm:$0xff]  ;;  %s1349_s20 = sshll.u32 %s1737_s24, 7 }
 0x524   : > { %1474 = dma.vmem_to_hbm [thread:$0]  (%p2245_p7), %s2117_s13, 512, %s2115_s23, %s1134_s27, %s1759_s25, %s1759_s25, %s1755_s1  }
 0x525   : > { %s506_s14 = scalar_lea.vmem [#allocation7], %s1983_s29  ;;  %s2152_s18 = scalar_lea.hbm %s2213_s11, %s1349_s20 }
 0x526   : > { %s1148_s17 = sshll.u32 %s506_s14, 4  ;;  %s1129_s1 = scalar_lea.sflag [#allocation4], %s1980_s28  ;;  %s2154_s17 = int_to_ptr.vmem [resolvable:$true] %s1148_s17 }
 0x527   : > { %s1655_s13 = scalar_lea.vmem %s2154_s17, 128  ;;  %s1760_s24 = smov [#allocation7]  }
 0x528   : > { %p1656_p12 = scmp.ne.s32.totalorder %s2154_s17, %s1655_s13  ;;  %s1659_s29 = sshll.u32 %s1760_s24, 4  ;;  %s1660_s29 = int_to_ptr.vmem [resolvable:$false] %s1659_s29 }
 0x529   : > { %s1661_s23 = scalar_lea.vmem %s1660_s29, 256  ;;  %p1662_p9 = scmp.lt.s32.totalorder %s2154_s17, %s1660_s29 }
 0x52a   : > { %p1657_p1 = pnand %p1656_p12, %p2245_p7  ;;  %p1663_p11 = scmp.lt.s32.totalorder %s1661_s23, %s1655_s13 }
 0x52c   : > { %p1658_p2 = pneg %p1657_p1  ;;  %p1664_p3 = por %p1663_p11, %p1662_p9 }
 0x52e   : > { %p1665_p6 = pnand %p1664_p3, %p1658_p2 }
 0x5e9   : > { %v1123_v31 = vpop.f32.mrb[6].mxu1 }
 0x5ea   : > { %v1124_v32 = vadd.f32 %v1345_v30, %v1123_v31  ;;  %v1444_v33 = vpop.f32.mrb[7].mxu1 }
 0x5ec   : > { %1127 = vst.msk [vmem:[%s506_s14] sm:$0xff] %vm535_vm1, %v1124_v32 }
 0x5ed   : > { %1668 = shalt.err (!%p1665_p6)
}
 0x5ee   : > { %s1669_s28 = scalar_lea.hbm %s2152_s18, 128  ;;  %s1673_s21 = scalar_lea.hbm %s2213_s11, 256 }
 0x5ef   : > { %p1670_p13 = scmp.ne.s32.totalorder %s2152_s18, %s1669_s28  ;;  %p1674_p5 = scmp.lt.u32.totalorder %s2152_s18, %s2213_s11 }
 0x5f0   : > { %p1675_p4 = scmp.lt.u32.totalorder %s1673_s21, %s1669_s28  ;;  %p1677_p12 = scmp.lt.u32.totalorder %s1669_s28, %s2152_s18 }
 0x5f1   : > { %p1671_p8 = pnand %p1670_p13, %p2245_p7 }
 0x5f2   : > { %p1676_p10 = por %p1675_p4, %p1674_p5 }
 0x5f3   : > { %p1672_p0 = pneg %p1671_p8 }
 0x5f4   : > { %p1678_p1 = por %p1677_p12, %p1676_p10 }
 0x5f6   : > { %p1679_p2 = pnand %p1678_p1, %p1672_p0 }
 0x5f8   : > { %1682 = shalt.err (!%p1679_p2)
}
 0x5f9   : > { %1473 = dma.vmem_to_hbm [thread:$0]  (%p2245_p7), %s2154_s17, 128, %s2152_s18, %s1129_s1  }
 0x5fa PF: > { %s2246_s14 = sld [smem:[#allocation14_spill]]  ;;  %s2247_s19 = sld [smem:[#allocation19_spill]] }
 0x5fb   : > { %p2249_p11 = scmp.ge.s32.totalorder %s1745_s26, 2 }
 0x600   : > { %s1177_s30 = sand.u32 1, %s2246_s14   ;;  %p2248_p9 = scmp.ne.s32.totalorder %s2247_s19, 0 }
 0x601   : > { %s1178_s13 = scalar_lea.sflag [#allocation4], %s1177_s30 }
 0x602   : > { %p1485_p3 = pnand %p2249_p11, %p2248_p9 }
 0x604   : > { %1716 = dma.done.wait (!%p1485_p3), %s1178_s13, 128  }
 0x605   : > { %1718 = vsyncadd (!%p1485_p3), %s1178_s13, 4294967168  ;;  %s1187_s24 = scalar_lea.sflag [#allocation9], %s1177_s30 }
 0x606   : > { %1720 = dma.done.wait (!%p1485_p3), %s1187_s24, 512  }
 0x607   : > { %1722 = vsyncadd (!%p1485_p3), %s1187_s24, 4294966784  ;;  %s35_s26 = sadd.s32 1, %s1745_s26   ;;  %s2250_s16 = sld [smem:[#allocation15_spill]] }
 0x608   : > { %p32_p6 = scmp.ge.s32.totalorder %s35_s26, 4   ;;  %s2251_s23 = sld [smem:[#allocation18_spill]] }
 0x609   : > { %s2252_s24 = sld [smem:[#allocation16_spill]]  ;;  %s2253_s25 = sld [smem:[#allocation17_spill]] }
 0x60a   : > { %s2254_s21 = smov %s1729_s22  ;;  %34 = sbr.rel (!%p32_p6) target bundleno = 12 (0xc), region = 142 }
 0x60d   : > { %s2255_s22 = smov %s2250_s16 }
 0x611   :  { %1192 = vsyncpa [#allocation3], 1 }
 0x612   :  { %1194 = vsyncpa [#allocation3 + $0x1], 1 }
 0x613   :  { %1195 = vsyncpa [#allocation6], 1 }
 0x614   :  { %1197 = vsyncpa [#allocation6 + $0x1], 1 }
 0x615   :  { %1198 = vsyncpa [#allocation4], 1 }
 0x616   :  { %1200 = vsyncpa [#allocation4 + $0x1], 1 }
 0x617   :  { %1201 = vsyncpa [#allocation9], 1 }
 0x618   :  { %1203 = vsyncpa [#allocation9 + $0x1], 1 }

</bundles_post_ra>
